<compile_context>
chip_gen: v6e
topology: v6e:2x2x1
jax: 0.10.0
libtpu: 0.0.40
codegen_flags: <defaults>
</compile_context>

<pallas_src>
import jax
import jax.numpy as jnp
from jax.experimental import pallas as pl
from jax.experimental.pallas import tpu as pltpu


LANE = 128      # vreg lane width  -> feature dims / fused n_pad align to this
SUBLANE = 8     # vreg sublane width


def _round_up(v, m):
    return (v + m - 1) // m * m


# ----------------------------------------------------------------------------
# Generation-aware hardware queries (single source of truth for budgets).
# ----------------------------------------------------------------------------
def _device_kind():
    try:
        return jax.devices()[0].device_kind.lower()
    except Exception:
        return ""


def _tpu_vmem_capacity():
    try:
        return int(pltpu.get_tpu_info().vmem_capacity_bytes)
    except Exception:
        pass
    kind = _device_kind()
    if "v7" in kind:
        return 64 << 20          # v7x: 64 MiB per TensorCore
    if kind:
        return 128 << 20         # v5e / v6e: 128 MiB
    return 64 << 20              # unknown -> conservative


def _mxu_tile():
    kind = _device_kind()
    if "v6" in kind or "v7" in kind:
        return 256               # 256x256 MXU
    return 128                   # v5e: 4x 128x128 MXU


def _num_tensorcores_per_chip():
    kind = _device_kind()
    if "v7" in kind or "v4" in kind or "v5p" in kind:
        return 2
    return 1


def _vmem_limit(bytes_needed, capacity):
    # Explicit scoped-VMEM request: ~1.3x headroom over the computed footprint,
    # never below the 32 MiB default, never above ~85% of physical VMEM
    # (~54 MiB on v7x, ~108 MiB on v5e/v6e).
    cap = int(0.85 * capacity)
    return int(min(max(int(1.3 * bytes_needed) + (1 << 20), 32 << 20), cap))


def _choose_tiles(n_pad, p, isz, vmem_budget, mxu_tile, num_cores):
    """Derive (tm, tk) for the streamed A@XW kernel from the VMEM budget."""
    tk_cands = [t for t in (2048, 1024, 512, 256, 128)
                if t <= n_pad and n_pad % t == 0]
    if not tk_cands:
        tk_cands = [n_pad]
    tm_pref = max(2 * mxu_tile, 256)
    tm_cands = []
    for t in (tm_pref, mxu_tile, 128):
        if t <= n_pad and n_pad % t == 0 and t not in tm_cands:
            tm_cands.append(t)
    if not tm_cands:
        tm_cands = [n_pad]
    # Megacore: keep >= num_cores row tiles when possible so the 'parallel'
    # row axis actually splits across TensorCores.
    mc = [t for t in tm_cands if n_pad // t >= num_cores]
    if mc:
        tm_cands = mc
    # Prefer the largest tk (big, lane-contiguous A DMAs), then the largest tm.
    for tk in tk_cands:
        for tm in tm_cands:
            need = (2 * tm * tk * isz        # streamed A tiles (double-buffered)
                    + n_pad * p * isz        # resident XW
                    + 2 * tm * p * 4         # resident/double-buffered f32 out
                    + 4 * p)                 # bias
            if need <= vmem_budget:
                return tm, tk
    return tm_cands[-1], tk_cands[-1]


# ----------------------------------------------------------------------------
# Fused all-layers kernel (A_norm resident in VMEM).
#   grid = (num_layer,); A_norm / X blocks are constant across the grid so
#   Pallas fetches them once; per-layer (128-padded) W / b stream in; the
#   running activation is carried in an f32 VMEM scratch (no bf16 carry).
# ----------------------------------------------------------------------------
def _fused_encoder_kernel(alpha_ref,   # SMEM  (L,)          PReLU slopes
                          a_ref,       # VMEM  (N_pad,N_pad)  resident (compute dtype)
                          x_ref,       # VMEM  (N_pad,P)      resident (f32)
                          w_ref,       # VMEM  (1,P,P)        this layer's W
                          b_ref,       # VMEM  (1,1,P)        this layer's b (f32)
                          out_ref,     # VMEM  (1,N_pad,P)    output slab
                          act_ref):    # VMEM scratch (N_pad,P) f32 running act
    l = pl.program_id(0)

    @pl.when(l == 0)
    def _():
        act_ref[...] = x_ref[...]

    # Cast only the matmul operands to the compute dtype; accumulate in f32.
    act_c = act_ref[...].astype(w_ref.dtype)
    xw = jnp.dot(act_c, w_ref[0], preferred_element_type=jnp.float32)
    h = jnp.dot(a_ref[...], xw.astype(a_ref.dtype),
                preferred_element_type=jnp.float32)
    h = h + b_ref[0]                          # (1,P) broadcasts over rows (f32)
    alpha = alpha_ref[l]
    h = jnp.where(h > 0, h, alpha * h)        # PReLU epilogue in f32
    out_ref[0] = h.astype(out_ref.dtype)
    act_ref[...] = h                          # f32 carry to the next layer


def fused_gcn_encoder(a_norm, x, weights, biases, alphas, *,
                      compute_dtype=jnp.bfloat16, out_dtype=jnp.float32,
                      capacity=None, emit_all=True):
    n = x.shape[0]
    num_layer = len(weights)
    p = _round_up(max([x.shape[1]] + [w.shape[1] for w in weights]), LANE)
    n_pad = _round_up(n, LANE)                 # 128-aligned contraction dim
    isz = jnp.dtype(compute_dtype).itemsize
    out_isz = jnp.dtype(out_dtype).itemsize
    if capacity is None:
        capacity = _tpu_vmem_capacity()

    # Zero padding keeps the math exact: padded A rows/cols are zero, padded W
    # rows/cols are zero, padded b entries are zero.
    a_pad = jnp.zeros((n_pad, n_pad), compute_dtype).at[:n, :n].set(
        a_norm.astype(compute_dtype))
    x_pad = jnp.zeros((n_pad, p), jnp.float32).at[:n, :x.shape[1]].set(
        x.astype(jnp.float32))
    w_pad = jnp.zeros((num_layer, p, p), compute_dtype)
    b_pad = jnp.zeros((num_layer, 1, p), jnp.float32)
    for i, (w, b) in enumerate(zip(weights, biases)):
        w_pad = w_pad.at[i, :w.shape[0], :w.shape[1]].set(w.astype(compute_dtype))
        b_pad = b_pad.at[i, 0, :b.shape[-1]].set(
            b.reshape(-1).astype(jnp.float32))
    alpha_arr = jnp.stack(alphas).astype(jnp.float32)            # (L,)

    n_out = num_layer if emit_all else 1
    out_map = (lambda l: (l, 0, 0)) if emit_all else (lambda l: (0, 0, 0))

    need = (n_pad * n_pad * isz              # resident A
            + 2 * n_pad * p * 4              # X (f32) + f32 activation scratch
            + 2 * (p * p * isz + p * 4)      # W, b (double-buffered)
            + 2 * n_pad * p * out_isz)       # output slab(s)
    vmem_limit = _vmem_limit(need, capacity)

    out = pl.pallas_call(
        _fused_encoder_kernel,
        out_shape=jax.ShapeDtypeStruct((n_out, n_pad, p), out_dtype),
        grid_spec=pltpu.PrefetchScalarGridSpec(
            num_scalar_prefetch=0,
            grid=(num_layer,),
            in_specs=[
                pl.BlockSpec(memory_space=pltpu.MemorySpace.SMEM),   # alpha
                pl.BlockSpec((n_pad, n_pad), lambda l: (0, 0)),      # A resident
                pl.BlockSpec((n_pad, p), lambda l: (0, 0)),          # X resident
                pl.BlockSpec((1, p, p), lambda l: (l, 0, 0)),        # W[l]
                pl.BlockSpec((1, 1, p), lambda l: (l, 0, 0)),        # b[l]
            ],
            out_specs=pl.BlockSpec((1, n_pad, p), out_map),
            scratch_shapes=[pltpu.VMEM((n_pad, p), jnp.float32)],
        ),
        compiler_params=pltpu.CompilerParams(
            # Layers are sequential (activation carried in scratch).
            # TODO(synk): megacore row-parallelism for the fused path needs
            # VMEM_SHARED activations + core barriers.
            dimension_semantics=("arbitrary",),
            vmem_limit_bytes=vmem_limit),
    )(alpha_arr, a_pad, x_pad, w_pad, b_pad)
    return out   # [n_out, n_pad, p] (padded)


# ----------------------------------------------------------------------------
# Tiled per-layer kernel for large graphs (A_norm streamed, X@W resident).
#   grid = (N/tm 'parallel', N/tk 'arbitrary'); accumulation happens directly
#   in the resident f32 output block; bias + PReLU applied only on the last
#   reduction step.
# ----------------------------------------------------------------------------
def gcn_layer_tiled(a_pad, xw_pad, b_pad, alpha_arr, *, tm, tk, capacity=None):
    n_pad, p = xw_pad.shape
    assert a_pad.shape == (n_pad, n_pad)
    assert n_pad % tm == 0 and n_pad % tk == 0
    n_k = n_pad // tk
    isz = jnp.dtype(a_pad.dtype).itemsize
    if capacity is None:
        capacity = _tpu_vmem_capacity()

    def kernel(alpha_ref, a_ref, xw_ref, b_ref, o_ref):
        k = pl.program_id(1)

        @pl.when(k == 0)
        def _():
            o_ref[...] = jnp.zeros_like(o_ref)

        start = pl.multiple_of(k * tk, tk)
        # Accumulate directly into the resident f32 output block (no scratch).
        o_ref[...] += jnp.dot(a_ref[...], xw_ref[pl.ds(start, tk), :],
                              preferred_element_type=jnp.float32)

        @pl.when(k == n_k - 1)
        def _():                                      # epilogue only once
            h = o_ref[...] + b_ref[...]
            o_ref[...] = jnp.where(h > 0, h, alpha_ref[0] * h)

    need = (2 * tm * tk * isz          # streamed A tiles (double-buffered)
            + n_pad * p * isz          # resident XW
            + p * 4                    # bias
            + 2 * tm * p * 4)          # f32 output blocks
    vmem_limit = _vmem_limit(need, capacity)

    # TODO(synk): consider pipeline_mode=pl.Buffered(3) on the A stream if the
    # DMA is still exposed on v5e after the larger tk.
    return pl.pallas_call(
        kernel,
        out_shape=jax.ShapeDtypeStruct((n_pad, p), jnp.float32),
        grid_spec=pltpu.PrefetchScalarGridSpec(
            num_scalar_prefetch=0,
            grid=(n_pad // tm, n_k),
            in_specs=[
                pl.BlockSpec(memory_space=pltpu.MemorySpace.SMEM),     # alpha (1,)
                pl.BlockSpec((tm, tk), lambda i, k: (i, k)),           # stream A
                pl.BlockSpec((n_pad, p), lambda i, k: (0, 0)),         # XW resident
                pl.BlockSpec((1, p), lambda i, k: (0, 0)),             # bias
            ],
            out_specs=pl.BlockSpec((tm, p), lambda i, k: (i, 0)),
        ),
        compiler_params=pltpu.CompilerParams(
            # Row tiles are independent -> megacore-parallel on dual-TC chips;
            # the k (reduction) axis is last and 'arbitrary'.
            dimension_semantics=("parallel", "arbitrary"),
            vmem_limit_bytes=vmem_limit),
    )(alpha_arr, a_pad, xw_pad, b_pad)


# ----------------------------------------------------------------------------
# Glue: dense GCN normalization  A_norm = D^{-1/2} (A + I) D^{-1/2}
# TODO(synk): for very large graphs this dense O(N^2) construction dominates;
#             a sparse/blocked build would be needed before the kernel matters.
# ----------------------------------------------------------------------------
def gcn_norm_dense(edge_index, edge_weight, num_nodes):
    a = jnp.zeros((num_nodes, num_nodes), jnp.float32)
    a = a.at[edge_index[0], edge_index[1]].add(edge_weight.astype(jnp.float32))
    a = a + jnp.eye(num_nodes, dtype=jnp.float32)          # self loops
    deg = a.sum(axis=1)
    d_inv_sqrt = jnp.where(deg > 0, 1.0 / jnp.sqrt(deg), 0.0)
    return d_inv_sqrt[:, None] * a * d_inv_sqrt[None, :]


# ----------------------------------------------------------------------------
# Encoder: mirrors the PyTorch module's forward (norm=None, drop_ratio=0).
# ----------------------------------------------------------------------------
class EncoderPallas:
    def __init__(self, in_dim, hid_dim, out_dim, num_layer, key,
                 drop_ratio=0, act='prelu', norm=None, emb_act=None, bias=True):
        # TODO(synk): norm layers (norm=None in the spec default) not implemented.
        # TODO(synk): dropout with drop_ratio > 0 needs an in-kernel PRNG mask.
        assert norm is None and drop_ratio == 0 and act == 'prelu'
        self.num_layer = num_layer
        self.emb_dim = [in_dim] + [hid_dim] * (num_layer - 1) + [out_dim]
        self.use_bias = bias
        self.weights, self.biases, self.alphas = [], [], []
        for i in range(num_layer):
            key, wk = jax.random.split(key)
            fin, fout = self.emb_dim[i], self.emb_dim[i + 1]
            limit = (6.0 / (fin + fout)) ** 0.5          # glorot-uniform (GCNConv)
            w = jax.random.uniform(wk, (fin, fout), jnp.float32, -limit, limit)
            # bias=False means "no bias"; a zero bias is numerically identical
            # (GCNConv also zero-inits its bias when bias=True).
            b = jnp.zeros((fout,), jnp.float32)
            self.weights.append(w)
            self.biases.append(b)
            if i != num_layer - 1 or emb_act:
                self.alphas.append(jnp.array(0.25, jnp.float32))   # nn.PReLU()
            else:
                self.alphas.append(jnp.array(1.0, jnp.float32))    # identity

    # ---- Pallas forward ----------------------------------------------------
    def forward(self, x, edge_index, edge_weight, all=True,
                compute_dtype=jnp.bfloat16, out_dtype=jnp.float32,
                force_tiled=False):
        n = x.shape[0]
        a_norm = gcn_norm_dense(edge_index, edge_weight, n)
        capacity = _tpu_vmem_capacity()
        p = _round_up(max(self.emb_dim), LANE)
        n_pad = _round_up(n, LANE)
        isz = jnp.dtype(compute_dtype).itemsize
        out_isz = jnp.dtype(out_dtype).itemsize
        fused_bytes = (n_pad * n_pad * isz + 2 * n_pad * p * 4
                       + 2 * (p * p * isz + p * 4) + 2 * n_pad * p * out_isz)
        if force_tiled or fused_bytes > int(0.75 * capacity):
            outs = self._forward_tiled(a_norm, x, compute_dtype, capacity)
        else:
            outs = self._forward_fused(a_norm, x, compute_dtype, out_dtype,
                                       capacity, emit_all=all)
        return outs if all else outs[-1]

    def _forward_fused(self, a_norm, x, compute_dtype, out_dtype, capacity,
                       emit_all):
        n = x.shape[0]
        slab = fused_gcn_encoder(a_norm, x, self.weights, self.biases,
                                 self.alphas, compute_dtype=compute_dtype,
                                 out_dtype=out_dtype, capacity=capacity,
                                 emit_all=emit_all)
        if emit_all:
            return [slab[i, :n, :self.emb_dim[i + 1]]
                    for i in range(self.num_layer)]
        return [slab[0, :n, :self.emb_dim[-1]]]

    def _forward_tiled(self, a_norm, x, compute_dtype, capacity):
        n = x.shape[0]
        p = _round_up(max(self.emb_dim), LANE)
        isz = jnp.dtype(compute_dtype).itemsize
        mxu = _mxu_tile()
        cores = _num_tensorcores_per_chip()
        n_pad = _round_up(n, 256)          # so 128/256-multiple tiles divide evenly
        tm, tk = _choose_tiles(n_pad, p, isz, int(0.6 * capacity), mxu, cores)

        a_pad = jnp.zeros((n_pad, n_pad), compute_dtype).at[:n, :n].set(
            a_norm.astype(compute_dtype))
        # Activation carried in f32 between layers (no bf16 error compounding).
        act = jnp.zeros((n_pad, p), jnp.float32).at[:n, :x.shape[1]].set(
            x.astype(jnp.float32))
        outs = []
        for i in range(self.num_layer):
            fin, fout = self.emb_dim[i], self.emb_dim[i + 1]
            w_pad = jnp.zeros((p, p), jnp.float32).at[:fin, :fout].set(
                self.weights[i])
            b_pad = jnp.zeros((1, p), jnp.float32).at[0, :fout].set(self.biases[i])
            # X@W is the small term; computed in XLA (f32), streamed-kernel
            # operand cast to the compute dtype.
            xw = jnp.dot(act, w_pad,
                         preferred_element_type=jnp.float32).astype(compute_dtype)
            h = gcn_layer_tiled(a_pad, xw, b_pad, self.alphas[i].reshape(1),
                                tm=tm, tk=tk, capacity=capacity)
            outs.append(h[:n, :fout])
            # Zero padded rows so a nonzero bias can never leak through padding.
            act = h.at[n:, :].set(0.0)
        return outs

    # ---- Pure-JAX reference for verification -------------------------------
    def forward_ref(self, x, edge_index, edge_weight, all=True):
        n = x.shape[0]
        a_norm = gcn_norm_dense(edge_index, edge_weight, n)
        enc_list = [x]
        for i in range(self.num_layer):
            h = a_norm @ (enc_list[i] @ self.weights[i]) + self.biases[i][None, :]
            alpha = self.alphas[i]
            h = jnp.where(h > 0, h, alpha * h)
            enc_list.append(h)
        return enc_list[1:] if all else enc_list[-1]


if __name__ == "__main__":
    key = jax.random.PRNGKey(0)
    k_x, k_w, k_p, k_x2, k_w2 = jax.random.split(key, 5)

    # ----------------------- small graph: fused resident path ---------------
    N, IN_DIM, HID_DIM, OUT_DIM, NUM_LAYER = 16, 8, 32, 16, 2
    x = jax.random.normal(k_x, (N, IN_DIM), jnp.float32)
    src = jnp.concatenate([jnp.arange(N), (jnp.arange(N) + 1) % N])
    dst = jnp.concatenate([(jnp.arange(N) + 1) % N, jnp.arange(N)])
    edge_index = jnp.stack([src, dst]).astype(jnp.int32)          # [2, 2N]
    edge_weight = jax.random.uniform(k_w, (2 * N,), jnp.float32, 0.5, 1.5)

    enc = EncoderPallas(IN_DIM, HID_DIM, OUT_DIM, NUM_LAYER, key=k_p)
    refs = enc.forward_ref(x, edge_index, edge_weight, all=True)

    # f32 fused path (tight tolerance).
    outs = enc.forward(x, edge_index, edge_weight, all=True,
                       compute_dtype=jnp.float32)
    outs = [jax.block_until_ready(o) for o in outs]
    for o, r in zip(outs, refs):
        assert o.shape == r.shape
        assert jnp.allclose(o, r, atol=1e-4, rtol=1e-4), "fused f32 mismatch"

    # default bf16-streaming fused path (f32 accumulation + f32 act carry).
    outs_bf16 = enc.forward(x, edge_index, edge_weight, all=True)
    outs_bf16 = [jax.block_until_ready(o) for o in outs_bf16]
    for o, r in zip(outs_bf16, refs):
        assert o.shape == r.shape
        assert jnp.allclose(o, r, atol=5e-2, rtol=5e-2), "fused bf16 mismatch"

    # all=False: only the last layer's slab is written back.
    last = enc.forward(x, edge_index, edge_weight, all=False,
                       compute_dtype=jnp.float32)
    last = jax.block_until_ready(last)
    assert last.shape == refs[-1].shape
    assert jnp.allclose(last, refs[-1], atol=1e-4, rtol=1e-4), "last-only mismatch"

    # ----------------------- larger graph: tiled streaming path -------------
    N2 = 256
    x2 = jax.random.normal(k_x2, (N2, IN_DIM), jnp.float32)
    idx = jnp.arange(N2)
    src2 = jnp.concatenate([idx, idx, idx,
                            (idx + 1) % N2, (idx + 5) % N2, (idx + 29) % N2])
    dst2 = jnp.concatenate([(idx + 1) % N2, (idx + 5) % N2, (idx + 29) % N2,
                            idx, idx, idx])
    edge_index2 = jnp.stack([src2, dst2]).astype(jnp.int32)
    edge_weight2 = jax.random.uniform(k_w2, (src2.shape[0],), jnp.float32, 0.5, 1.5)

    enc2 = EncoderPallas(IN_DIM, HID_DIM, OUT_DIM, NUM_LAYER, key=k_p)
    refs2 = enc2.forward_ref(x2, edge_index2, edge_weight2, all=True)

    outs2 = enc2.forward(x2, edge_index2, edge_weight2, all=True,
                         compute_dtype=jnp.float32, force_tiled=True)
    outs2 = [jax.block_until_ready(o) for o in outs2]
    for o, r in zip(outs2, refs2):
        assert o.shape == r.shape
        assert jnp.allclose(o, r, atol=1e-4, rtol=1e-4), "tiled f32 mismatch"

    outs2_bf16 = enc2.forward(x2, edge_index2, edge_weight2, all=True,
                              force_tiled=True)        # default bf16 streaming
    outs2_bf16 = [jax.block_until_ready(o) for o in outs2_bf16]
    for o, r in zip(outs2_bf16, refs2):
        assert o.shape == r.shape
        assert jnp.allclose(o, r, atol=5e-2, rtol=5e-2), "tiled bf16 mismatch"

    print("KERNEL_OK")
</pallas_src>

<mosaic_0001>
module attributes {stable_mosaic.version = 11 : i64} {
  func.func @_fused_encoder_kernel(%arg0: i32, %arg1: memref<2xf32, #tpu.memory_space<smem>>, %arg2: memref<128x128xf32, #tpu.memory_space<vmem>>, %arg3: memref<128x128xf32, #tpu.memory_space<vmem>>, %arg4: memref<1x128x128xf32, #tpu.memory_space<vmem>>, %arg5: memref<1x1x128xf32, #tpu.memory_space<vmem>>, %arg6: memref<1x128x128xf32, #tpu.memory_space<vmem>>, %arg7: memref<128x128xf32, #tpu.memory_space<vmem>>) attributes {dimension_semantics = [#tpu.dimension_semantics<arbitrary>], iteration_bounds = array<i64: 2>, scalar_prefetch = 0 : i64, scratch_operands = 1 : i64, tpu.core_type = #tpu.core_type<tc>, window_params = [{transform_indices = @transform_0, window_bounds = array<i64: 2>}, {pipeline_mode = #tpu.pipeline_mode<synchronous>, transform_indices = @transform_1, window_bounds = array<i64: 128, 128>}, {pipeline_mode = #tpu.pipeline_mode<synchronous>, transform_indices = @transform_2, window_bounds = array<i64: 128, 128>}, {transform_indices = @transform_3, window_bounds = array<i64: 1, 128, 128>}, {transform_indices = @transform_4, window_bounds = array<i64: 1, 1, 128>}, {transform_indices = @transform_5, window_bounds = array<i64: 1, 128, 128>}]} {
    %c0_i32 = arith.constant 0 : i32
    %0 = arith.cmpi eq, %arg0, %c0_i32 : i32
    %1 = arith.extui %0 : i1 to i32
    %c0_i32_0 = arith.constant 0 : i32
    %2 = arith.cmpi ne, %1, %c0_i32_0 : i32
    scf.if %2 {
      %c0_17 = arith.constant 0 : index
      %c0_18 = arith.constant 0 : index
      %24 = vector.load %arg3[%c0_17, %c0_18] : memref<128x128xf32, #tpu.memory_space<vmem>>, vector<128x128xf32>
      %c0_19 = arith.constant 0 : index
      %c0_20 = arith.constant 0 : index
      %25 = vector.load %arg7[%c0_19, %c0_20] : memref<128x128xf32, #tpu.memory_space<vmem>>, vector<128x128xf32>
      tpu.vector_store %arg7[%c0_19, %c0_20], %24 {strides = array<i32>} : memref<128x128xf32, #tpu.memory_space<vmem>>, vector<128x128xf32>,
    } else {
    }
    %c0 = arith.constant 0 : index
    %c0_1 = arith.constant 0 : index
    %3 = vector.load %arg7[%c0, %c0_1] : memref<128x128xf32, #tpu.memory_space<vmem>>, vector<128x128xf32>
    %c0_2 = arith.constant 0 : index
    %c0_3 = arith.constant 0 : index
    %c0_4 = arith.constant 0 : index
    %4 = vector.load %arg4[%c0_2, %c0_3, %c0_4] : memref<1x128x128xf32, #tpu.memory_space<vmem>>, vector<1x128x128xf32>
    %5 = vector.shape_cast %4 : vector<1x128x128xf32> to vector<128x128xf32>
    %cst = arith.constant dense<0.000000e+00> : vector<128x128xf32>
    %6 = tpu.matmul %3, %5, %cst {dimension_numbers = #tpu.dot_dimension_numbers<[1], [0], [0], [1], [0, 0, 1, 1], [], []>} : vector<128x128xf32>, vector<128x128xf32>, vector<128x128xf32> -> vector<128x128xf32>
    %c0_5 = arith.constant 0 : index
    %c0_6 = arith.constant 0 : index
    %7 = vector.load %arg2[%c0_5, %c0_6] : memref<128x128xf32, #tpu.memory_space<vmem>>, vector<128x128xf32>
    %cst_7 = arith.constant dense<0.000000e+00> : vector<128x128xf32>
    %8 = tpu.matmul %7, %6, %cst_7 {dimension_numbers = #tpu.dot_dimension_numbers<[1], [0], [0], [1], [0, 0, 1, 1], [], []>} : vector<128x128xf32>, vector<128x128xf32>, vector<128x128xf32> -> vector<128x128xf32>
    %c0_8 = arith.constant 0 : index
    %c0_9 = arith.constant 0 : index
    %c0_10 = arith.constant 0 : index
    %9 = vector.load %arg5[%c0_8, %c0_9, %c0_10] : memref<1x1x128xf32, #tpu.memory_space<vmem>>, vector<1x1x128xf32>
    %10 = vector.shape_cast %9 : vector<1x1x128xf32> to vector<1x128xf32>
    %11 = vector.broadcast %10 : vector<1x128xf32> to vector<128x128xf32>
    %12 = arith.addf %8, %11 : vector<128x128xf32>
    %13 = arith.index_cast %arg0 : i32 to index
    %14 = memref.load %arg1[%13] : memref<2xf32, #tpu.memory_space<smem>>
    %cst_11 = arith.constant 0.000000e+00 : f32
    %15 = vector.broadcast %cst_11 : f32 to vector<128x128xf32>
    %16 = arith.cmpf ogt, %12, %15 : vector<128x128xf32>
    %17 = vector.broadcast %14 : f32 to vector<128x128xf32>
    %18 = arith.mulf %17, %12 : vector<128x128xf32>
    %19 = arith.select %16, %12, %18 : vector<128x128xi1>, vector<128x128xf32>
    %c0_12 = arith.constant 0 : index
    %c0_13 = arith.constant 0 : index
    %c0_14 = arith.constant 0 : index
    %20 = vector.load %arg6[%c0_12, %c0_13, %c0_14] : memref<1x128x128xf32, #tpu.memory_space<vmem>>, vector<1x128x128xf32>
    %21 = vector.shape_cast %20 : vector<1x128x128xf32> to vector<128x128xf32>
    %22 = vector.shape_cast %19 : vector<128x128xf32> to vector<1x128x128xf32>
    tpu.vector_store %arg6[%c0_12, %c0_13, %c0_14], %22 {strides = array<i32>} : memref<1x128x128xf32, #tpu.memory_space<vmem>>, vector<1x128x128xf32>,
    %c0_15 = arith.constant 0 : index
    %c0_16 = arith.constant 0 : index
    %23 = vector.load %arg7[%c0_15, %c0_16] : memref<128x128xf32, #tpu.memory_space<vmem>>, vector<128x128xf32>
    tpu.vector_store %arg7[%c0_15, %c0_16], %19 {strides = array<i32>} : memref<128x128xf32, #tpu.memory_space<vmem>>, vector<128x128xf32>,
    return
  }
  func.func @transform_0(%arg0: i32) -> i32 {
    %c0_i32 = arith.constant 0 : i32
    %c0_i32_0 = arith.constant 0 : i32
    return %c0_i32 : i32
  }
  func.func @transform_1(%arg0: i32) -> (i32, i32) {
    %c0_i32 = arith.constant 0 : i32
    %c0_i32_0 = arith.constant 0 : i32
    %c0_i32_1 = arith.constant 0 : i32
    return %c0_i32, %c0_i32_0 : i32, i32
  }
  func.func @transform_2(%arg0: i32) -> (i32, i32) {
    %c0_i32 = arith.constant 0 : i32
    %c0_i32_0 = arith.constant 0 : i32
    %c0_i32_1 = arith.constant 0 : i32
    return %c0_i32, %c0_i32_0 : i32, i32
  }
  func.func @transform_3(%arg0: i32) -> (i32, i32, i32) {
    %c0_i32 = arith.constant 0 : i32
    %c0_i32_0 = arith.constant 0 : i32
    %c0_i32_1 = arith.constant 0 : i32
    return %arg0, %c0_i32, %c0_i32_0 : i32, i32, i32
  }
  func.func @transform_4(%arg0: i32) -> (i32, i32, i32) {
    %c0_i32 = arith.constant 0 : i32
    %c0_i32_0 = arith.constant 0 : i32
    %c0_i32_1 = arith.constant 0 : i32
    return %arg0, %c0_i32, %c0_i32_0 : i32, i32, i32
  }
  func.func @transform_5(%arg0: i32) -> (i32, i32, i32) {
    %c0_i32 = arith.constant 0 : i32
    %c0_i32_0 = arith.constant 0 : i32
    %c0_i32_1 = arith.constant 0 : i32
    return %arg0, %c0_i32, %c0_i32_0 : i32, i32, i32
  }
}

</mosaic_0001>

<bundles_post_ra>
// kernel: tpu_custom_call.1
= control target key start
LH: loop header
LB: loop body
LE: loop exit
PB: predicated region body
PF: predicated region fallthrough
CT: control target
= control target key end

     0   :  { %s1683_s0 = inlined_call_operand.hbm [shape: f32[2], index: 0, kind: input, shape index: {}]   ;;  %s1684_s1 = inlined_call_operand.hbm [shape: f32[128,128], index: 1, kind: input, shape index: {}]   ;;  %s1685_s2 = inlined_call_operand.hbm [shape: f32[128,128], index: 2, kind: input, shape index: {}]   ;;  %s1686_s3 = inlined_call_operand.hbm [shape: f32[2,128,128], index: 3, kind: input, shape index: {}]   ;;  %s1687_s4 = inlined_call_operand.vmem [shape: f32[2,1,128], index: 4, kind: input, shape index: {}]   ;;  %s1688_s5 = inlined_call_operand.hbm [shape: f32[2,128,128], index: 5, kind: output, shape index: {}]  }
   0x1   :  { %1693 = sst [smem:[#allocation17_spill]] %s1683_s0 }
   0x2   :  { %10 = vsyncpa [#allocation6], 0 }
   0x3   :  { %11 = vsyncpa [#allocation4], 0 }
   0x4   :  { %12 = vsyncpa [#allocation9], 0 }
   0x5   :  { %13 = vsyncpa [#allocation5], 0 }
   0x6   :  { %15 = vsyncpa [#allocation5 + $0x1], 0  ;;  %s1375_s18 = smov 0   ;;  %s1377_s19 = smov 0  }
   0x7   :  { %s1379_s20 = smov 0   ;;  %s1381_s21 = smov 0  }
   0x8 LB: > { %s1396_s22 = sadd.s32 4294967295, %s1334_s21   ;;  %s886_s23 = sadd.s32 4294967294, %s1334_s21   ;;  %s1334_s21 = sphi %s1381_s21, %s1717_s21   ;;  %s1330_s20 = sphi %s1379_s20, %s1716_s20   ;;  %s1326_s19 = sphi %s1377_s19, %s1715_s19   ;;  %s1322_s18 = sphi %s1375_s18, %s1714_s18  }
   0x9   : > { %s1400_s24 = sadd.s32 1, %s1334_s21   ;;  %s91_s25 = sadd.s32 1, %s1330_s20 }
   0xa   : > { %s88_s26 = ssub.s32 %s1334_s21, %s1400_s24  ;;  %p98_p0 = scmp.ne.s32.totalorder %s1330_s20, %s1326_s19 }
   0xb   : > { %p89_p1 = scmp.eq.s32.totalorder %s88_s26, 0  ;;  %p99_p2 = scmp.eq.s32.totalorder %s1334_s21, 0 }
   0xc   : > { %p104_p3 = scmp.ne.s32.totalorder %s1326_s19, %s1322_s18  ;;  %p1692_p4 = scmp.eq.s32.totalorder %s1396_s22, 0 }
   0xd   : > { %s1412_s27 = scalar_select %p89_p1, %s1330_s20, %s91_s25  }
   0xe   : > { %p1414_p5 = por %p99_p2, %p98_p0  ;;  %p1420_p6 = por %p1692_p4, %p104_p3 }
   0xf   : > { %p154_p7 = scmp.eq.s32.totalorder %s1396_s22, 1  ;;  %p160_p8 = scmp.eq.s32.totalorder %s886_s23, 1 }
  0x10   : > { %s1695_s29 = scalar_select %p1420_p6, 1, 0 }
  0x11   : > { %p887_p9 = scmp.ge.s32.totalorder %s1334_s21, 1  ;;  %p167_p10 = scmp.lt.s32.totalorder %s1334_s21, 3 }
  0x12   : > { %p1427_p11 = por %p154_p7, %p98_p0  ;;  %p1431_p12 = por %p160_p8, %p104_p3 }
  0x13   : > { %p1435_p13 = pnand %p887_p9, %p167_p10  ;;  %s1336_s8 = smov [#allocation7]  }
  0x14   : > { %s1696_s30 = scalar_select %p1427_p11, 1, 0 }
  0x15   : > { %s1697_s6 = scalar_select %p1431_p12, 1, 0 }
  0x16   : > { %s1698_s7 = scalar_select %p1435_p13, 1, 0 }
  0x17   : > { %p1102_p2 = pneg %p1435_p13  ;;  %s188_s9 = sshll.u32 %s1336_s8, 4  ;;  %s189_s9 = int_to_ptr.vmem [resolvable:$true] %s188_s9 }
  0x18   : > { %p1123_p7 = scmp.lt.s32.totalorder %s1334_s21, 2  ;;  %s1178_s11 = scalar_lea.vmem %s189_s9, 2048 }
  0x19   : > { %p1444_p0 = pnand %p1102_p2, %p1692_p4  ;;  %p1179_p9 = scmp.ne.s32.totalorder %s189_s9, %s1178_s11 }
  0x1a   : > { %p1186_p12 = scmp.lt.s32.totalorder %s189_s9, %s189_s9  ;;  %p1187_p11 = scmp.lt.s32.totalorder %s1178_s11, %s1178_s11 }
  0x1b   : > { %p1169_p8 = pneg %p1444_p0 }
  0x1c   : > { %p1188_p6 = por %p1187_p11, %p1186_p12 }
  0x1d   : > { %p1181_p10 = pnand %p1179_p9, %p1169_p8 }
  0x1f   : > { %p1182_p1 = pneg %p1181_p10 }
  0x21   : > { %p1189_p13 = pnand %p1188_p6, %p1182_p1 }
  0x23   : > { %1192 = shalt.err (!%p1189_p13)
}
  0x24   : > { %s1337_s12 = smov 128   ;;  %s1338_s13 = smov 8  }
  0x25   : > { %1108 = dma.hbm_to_vmem [thread:$0]  (!%p1444_p0), %s1684_s1, 2048, %s189_s9, [#allocation4], %s1337_s12, %s1337_s12, %s1338_s13  }
  0x26   : > { %p1467_p11 = pnand %p1123_p7, %p1414_p5  ;;  %s1339_s17 = smov [#allocation8]  }
  0x27   : > { %s201_s23 = sshll.u32 %s1339_s17, 4  ;;  %s1340_s25 = smov [#allocation3]   ;;  %s202_s23 = int_to_ptr.vmem [resolvable:$true] %s201_s23 }
  0x28   : > { %s1701_s0 = sld [smem:[#allocation17_spill]]  ;;  %s1215_s11 = scalar_lea.vmem %s202_s23, 2048 }
  0x29   : > { %p1216_p6 = scmp.ne.s32.totalorder %s202_s23, %s1215_s11  ;;  %p1223_p1 = scmp.lt.s32.totalorder %s202_s23, %s202_s23 }
  0x2a   : > { %p1224_p5 = scmp.lt.s32.totalorder %s1215_s11, %s1215_s11 }
  0x2b   : > { %p1218_p12 = pnand %p1216_p6, %p1169_p8 }
  0x2c   : > { %p1225_p2 = por %p1224_p5, %p1223_p1 }
  0x2d   : > { %p1219_p13 = pneg %p1218_p12 }
  0x2e   : > { %1105 = dma.hbm_to_smem (!%p1444_p0), %s1701_s0, 16, %s1340_s25, [#allocation6]  }
  0x2f   : > { %p1226_p7 = pnand %p1225_p2, %p1219_p13 }
  0x31   : > { %1229 = shalt.err (!%p1226_p7)
}
  0x32   : > { %1111 = dma.hbm_to_vmem [thread:$0]  (!%p1444_p0), %s1685_s2, 2048, %s202_s23, [#allocation9], %s1337_s12, %s1337_s12, %s1338_s13  }
  0x33   : > { %s215_s14 = sand.u32 1, %s1334_s21   ;;  %s217_s15 = sand.u32 1, %s1330_s20  }
  0x34   : > { %s892_s17 = sshll.u32 %s217_s15, 7  ;;  %s908_s25 = sshll.u32 %s1334_s21, 11 }
  0x35   : > { %s1493_s11 = scalar_lea.hbm %s1686_s3, %s908_s25  ;;  %s219_s10 = scalar_lea.vmem [#allocation10], %s892_s17 }
  0x36   : > { %s226_s0 = sshll.u32 %s219_s10, 4  ;;  %s1497_s28 = scalar_lea.sflag [#allocation4], %s215_s14  ;;  %s1495_s0 = int_to_ptr.vmem [resolvable:$true] %s226_s0 }
  0x37   : > { %s1230_s9 = scalar_lea.hbm %s1493_s11, 2048  ;;  %p1232_p8 = pneg %p1467_p11 }
  0x38   : > { %p1231_p0 = scmp.ne.s32.totalorder %s1493_s11, %s1230_s9  ;;  %s1235_s25 = scalar_lea.hbm %s1686_s3, 4096 }
  0x39   : > { %p1236_p6 = scmp.lt.s32.totalorder %s1493_s11, %s1686_s3  ;;  %p1237_p12 = scmp.lt.s32.totalorder %s1235_s25, %s1230_s9 }
  0x3a   : > { %p1233_p9 = pnand %p1232_p8, %p1231_p0 }
  0x3b   : > { %p1238_p13 = por %p1237_p12, %p1236_p6 }
  0x3c   : > { %p1234_p10 = pneg %p1233_p9 }
  0x3e   : > { %p1239_p1 = pnand %p1238_p13, %p1234_p10 }
  0x40   : > { %1242 = shalt.err (!%p1239_p1)
}
  0x41   : > { %s1243_s14 = scalar_lea.vmem %s1495_s0, 2048  ;;  %s1341_s17 = smov [#allocation10]  }
  0x42   : > { %p1244_p5 = scmp.ne.s32.totalorder %s1495_s0, %s1243_s14  ;;  %s1248_s10 = sshll.u32 %s1341_s17, 4  ;;  %s1249_s10 = int_to_ptr.vmem [resolvable:$false] %s1248_s10 }
  0x43   : > { %s1250_s23 = scalar_lea.vmem %s1249_s10, 4096  ;;  %p1251_p0 = scmp.lt.s32.totalorder %s1495_s0, %s1249_s10 }
  0x44   : > { %p1246_p2 = pnand %p1244_p5, %p1232_p8  ;;  %p1252_p9 = scmp.lt.s32.totalorder %s1250_s23, %s1243_s14 }
  0x46   : > { %p1247_p7 = pneg %p1246_p2  ;;  %p1253_p3 = por %p1252_p9, %p1251_p0 }
  0x48   : > { %p1254_p4 = pnand %p1253_p3, %p1247_p7 }
  0x4a   : > { %1257 = shalt.err (!%p1254_p4)
}
  0x4b   : > { %1115 = dma.hbm_to_vmem [thread:$0]  (!%p1467_p11), %s1493_s11, 2048, %s1495_s0, %s1497_s28, %s1337_s12, %s1337_s12, %s1338_s13  }
  0x4c   : > { %p1702_p8 = scmp.ne.s32.totalorder %s1698_s7, 0 }
  0x4d   : > { %p1703_p10 = scmp.eq.s32.totalorder (!%p1702_p8), %s1396_s22, 0 }
  0x4e   : > { %244 = sbr.rel (%p1702_p8) target bundleno = 644 (0x284), region = 40 }
  0x53   : > { %1301 = dma.done.wait (%p1703_p10), [#allocation6], 16   ;;  %p1704_p6 = pmov %p1703_p10 }
  0x55   : > { %1303 = vsyncadd (%p1704_p6), [#allocation6], 4294967280  ;;  %p1705_p4 = pmov %p1704_p6 }
  0x57   : > { %1305 = dma.done.wait (%p1705_p4), [#allocation4], 2048   ;;  %p1706_p3 = pmov %p1705_p4 }
  0x59   : > { %1307 = vsyncadd (%p1706_p3), [#allocation4], 4294965248  ;;  %p1707_p12 = pmov %p1706_p3 }
  0x5a   : > { %p1708_p11 = pmov %p1706_p3 }
  0x5b   : > { %1309 = dma.done.wait (%p1707_p12), [#allocation9], 2048  }
  0x5c   : > { %1311 = vsyncadd (%p1708_p11), [#allocation9], 4294965248  ;;  %s258_s0 = sand.u32 1, %s1396_s22   ;;  %s260_s7 = sand.u32 1, %s1326_s19  }
  0x5d   : > { %s899_s12 = sshll.u32 %s260_s7, 7  ;;  %s259_s13 = scalar_lea.sflag [#allocation4], %s258_s0 }
  0x5e   : > { %s1539_s16 = scalar_lea.vmem [#allocation10], %s899_s12  ;;  %p1709_p13 = scmp.ne.s32.totalorder %s1695_s29, 0 }
  0x60   : > { %1313 = dma.done.wait (%p1709_p13), %s259_s13, 2048  }
  0x61   : > { %1315 = vsyncadd (%p1709_p13), %s259_s13, 4294965248 }
  0x62   : > { %267 = sfence }
  0x63   : > { %p293_p1 = scmp.lt.s32.totalorder %s1396_s22, 1  ;;  %s1553_s25 = scalar_lea.vmem [#allocation11], %s899_s12 }
  0x64   : > { %p1710_p5 = scmp.ne.s32.totalorder %s1396_s22, 0 }
  0x65   : > { %s1547_s11 = scalar_select %p293_p1, %s1396_s22, 1 }
  0x66   : > { %299 = sbr.rel (%p1710_p5) target bundleno = 116 (0x74), region = 60 }
  0x67   : > { %s295_s15 = scalar_lea.vmem %s1687_s4, %s1547_s11 }
  0x6b   : > { %v300_v0 = vld [vmem:[#allocation8] sm:$0xff]  ;;  %v301_v1 = vld [vmem:[#allocation8 + $0x8] sm:$0xff]  ;;  %v302_v2 = vld [vmem:[#allocation8 + $0x10] sm:$0xff] }
  0x6c   : > { %316 = vst [vmem:[#allocation2 + $0x30] sm:$0xff] %v300_v0  ;;  %317 = vst [vmem:[#allocation2] sm:$0xff] %v301_v1  ;;  %v303_v3 = vld [vmem:[#allocation8 + $0x18] sm:$0xff]  ;;  %v304_v4 = vld [vmem:[#allocation8 + $0x20] sm:$0xff] }
  0x6d   : > { %318 = vst [vmem:[#allocation2 + $0x58] sm:$0xff] %v302_v2  ;;  %v305_v5 = vld [vmem:[#allocation8 + $0x28] sm:$0xff]  ;;  %319 = vst [vmem:[#allocation2 + $0x18] sm:$0xff] %v303_v3  ;;  %v306_v6 = vld [vmem:[#allocation8 + $0x30] sm:$0xff] }
  0x6e   : > { %320 = vst [vmem:[#allocation2 + $0x50] sm:$0xff] %v304_v4  ;;  %321 = vst [vmem:[#allocation2 + $0x68] sm:$0xff] %v305_v5  ;;  %v307_v7 = vld [vmem:[#allocation8 + $0x38] sm:$0xff]  ;;  %v308_v8 = vld [vmem:[#allocation8 + $0x40] sm:$0xff] }
  0x6f   : > { %322 = vst [vmem:[#allocation2 + $0x8] sm:$0xff] %v306_v6  ;;  %323 = vst [vmem:[#allocation2 + $0x48] sm:$0xff] %v307_v7  ;;  %v309_v9 = vld [vmem:[#allocation8 + $0x48] sm:$0xff]  ;;  %v310_v10 = vld [vmem:[#allocation8 + $0x50] sm:$0xff] }
  0x70   : > { %324 = vst [vmem:[#allocation2 + $0x40] sm:$0xff] %v308_v8  ;;  %v311_v11 = vld [vmem:[#allocation8 + $0x58] sm:$0xff]  ;;  %325 = vst [vmem:[#allocation2 + $0x20] sm:$0xff] %v309_v9  ;;  %v312_v12 = vld [vmem:[#allocation8 + $0x60] sm:$0xff] }
  0x71   : > { %326 = vst [vmem:[#allocation2 + $0x10] sm:$0xff] %v310_v10  ;;  %327 = vst [vmem:[#allocation2 + $0x38] sm:$0xff] %v311_v11  ;;  %v313_v13 = vld [vmem:[#allocation8 + $0x68] sm:$0xff]  ;;  %v314_v14 = vld [vmem:[#allocation8 + $0x70] sm:$0xff] }
  0x72   : > { %328 = vst [vmem:[#allocation2 + $0x60] sm:$0xff] %v312_v12  ;;  %329 = vst [vmem:[#allocation2 + $0x70] sm:$0xff] %v313_v13  ;;  %v315_v15 = vld [vmem:[#allocation8 + $0x78] sm:$0xff] }
  0x73   : > { %330 = vst [vmem:[#allocation2 + $0x78] sm:$0xff] %v314_v14  ;;  %331 = vst [vmem:[#allocation2 + $0x28] sm:$0xff] %v315_v15 }
  0x74 PF: > { %v363_v16 = vld [vmem:[%s1539_s16 + $0x78] sm:$0xff]  ;;  %v362_v17 = vld [vmem:[%s1539_s16 + $0x70] sm:$0xff]  ;;  %v361_v18 = vld [vmem:[%s1539_s16 + $0x68] sm:$0xff]  ;;  %s677_s29 = sld [smem:[#allocation3 + %s1396_s22]]  ;;  %s909_s14 = sshll.u32 %s1396_s22, 11 }
  0x75   : > { %974 = vmatprep.subr.mxu0 %v363_v16  ;;  %v360_v19 = vld [vmem:[%s1539_s16 + $0x60] sm:$0xff]  ;;  %v332_v20 = vld [vmem:[#allocation2 + $0x30] sm:$0xff]  ;;  %v359_v21 = vld [vmem:[%s1539_s16 + $0x58] sm:$0xff]  ;;  %s773_s17 = sshll.u32 %s1553_s25, 4  ;;  %s1634_s22 = scalar_lea.hbm %s1688_s5, %s909_s14  ;;  %s1636_s17 = int_to_ptr.vmem [resolvable:$true] %s773_s17 }
  0x76   : > { %975 = vmatpush3.msra.mxu0 %v363_v16  ;;  %1006 = vmatprep.mubr.f32.mxu0 %v332_v20  ;;  %v358_v22 = vld [vmem:[%s1539_s16 + $0x50] sm:$0xff]  ;;  %v357_v23 = vld [vmem:[%s1539_s16 + $0x48] sm:$0xff]  ;;  %v356_v24 = vld [vmem:[%s1539_s16 + $0x40] sm:$0xff]  ;;  %s1642_s0 = scalar_lea.sflag [#allocation5], %s260_s7  ;;  %s1258_s12 = scalar_lea.vmem %s1636_s17, 2048 }
  0x77   : > { %976 = vmatprep.subr.mxu0 %v362_v17  ;;  %v355_v25 = vld [vmem:[%s1539_s16 + $0x38] sm:$0xff]  ;;  %v354_v26 = vld [vmem:[%s1539_s16 + $0x30] sm:$0xff]  ;;  %v353_v27 = vld [vmem:[%s1539_s16 + $0x28] sm:$0xff]  ;;  %p1259_p2 = scmp.ne.s32.totalorder %s1636_s17, %s1258_s12  ;;  %p1711_p7 = scmp.ne.s32.totalorder %s1696_s30, 0 }
  0x78   : > { %977 = vmatpush3.msra.mxu0 %v362_v17  ;;  %v352_v28 = vld [vmem:[%s1539_s16 + $0x20] sm:$0xff]  ;;  %v351_v29 = vld [vmem:[%s1539_s16 + $0x18] sm:$0xff]  ;;  %v350_v30 = vld [vmem:[%s1539_s16 + $0x10] sm:$0xff]  ;;  %s1342_s13 = smov [#allocation11]  }
  0x79   : > { %978 = vmatprep.subr.mxu0 %v361_v18  ;;  %v349_v31 = vld [vmem:[%s1539_s16 + $0x8] sm:$0xff]  ;;  %v348_v32 = vld [vmem:[%s1539_s16] sm:$0xff]  ;;  %v334_v34 = vld [vmem:[#allocation2 + $0x58] sm:$0xff]  ;;  %p1260_p0 = pnand %p1259_p2, %p1711_p7  ;;  %s1262_s16 = sshll.u32 %s1342_s13, 4  ;;  %s1263_s16 = int_to_ptr.vmem [resolvable:$false] %s1262_s16 }
  0x7a   : > { %979 = vmatpush3.msra.mxu0 %v361_v18  ;;  %v333_v33 = vld [vmem:[#allocation2] sm:$0xff]  ;;  %v335_v35 = vld [vmem:[#allocation2 + $0x18] sm:$0xff]  ;;  %v336_v36 = vld [vmem:[#allocation2 + $0x50] sm:$0xff]  ;;  %v1581_v18 = vstv %s677_s29  ;;  %s1264_s11 = scalar_lea.vmem %s1263_s16, 4096  ;;  %p1265_p8 = scmp.lt.s32.totalorder %s1636_s17, %s1263_s16 }
  0x7b   : > { %980 = vmatprep.subr.mxu0 %v360_v19  ;;  %v337_v37 = vld [vmem:[#allocation2 + $0x68] sm:$0xff]  ;;  %v340_v40 = vld [vmem:[#allocation2 + $0x40] sm:$0xff]  ;;  %v342_v42 = vld [vmem:[#allocation2 + $0x10] sm:$0xff]  ;;  %p1261_p9 = pneg %p1260_p0  ;;  %p1266_p10 = scmp.lt.s32.totalorder %s1264_s11, %s1258_s12 }
  0x7c   : > { %981 = vmatpush3.msra.mxu0 %v360_v19  ;;  %v338_v38 = vld [vmem:[#allocation2 + $0x8] sm:$0xff]  ;;  %v341_v41 = vld [vmem:[#allocation2 + $0x20] sm:$0xff]  ;;  %v343_v43 = vld [vmem:[#allocation2 + $0x38] sm:$0xff] }
  0x7d   : > { %982 = vmatprep.subr.mxu0 %v359_v21  ;;  %v339_v39 = vld [vmem:[#allocation2 + $0x48] sm:$0xff]  ;;  %v344_v44 = vld [vmem:[#allocation2 + $0x60] sm:$0xff]  ;;  %v345_v45 = vld [vmem:[#allocation2 + $0x70] sm:$0xff]  ;;  %p1267_p6 = por %p1266_p10, %p1265_p8 }
  0x7e   : > { %983 = vmatpush3.msra.mxu0 %v359_v21  ;;  %v346_v46 = vld [vmem:[#allocation2 + $0x78] sm:$0xff]  ;;  %v347_v47 = vld [vmem:[#allocation2 + $0x28] sm:$0xff]  ;;  %v509_v48 = vld [vmem:[#allocation7] sm:$0xff] }
  0x7f   : > { %984 = vmatprep.subr.mxu0 %v358_v22  ;;  %1062 = vmatprep.mubr.f32.mxu1 %v509_v48  ;;  %v510_v1 = vld [vmem:[#allocation7 + $0x8] sm:$0xff]  ;;  %v511_v2 = vld [vmem:[#allocation7 + $0x10] sm:$0xff]  ;;  %v512_v3 = vld [vmem:[#allocation7 + $0x18] sm:$0xff]  ;;  %p1268_p4 = pnand %p1267_p6, %p1261_p9 }
  0x80   : > { %985 = vmatpush3.msra.mxu0 %v358_v22  ;;  %v513_v4 = vld [vmem:[#allocation7 + $0x20] sm:$0xff]  ;;  %v514_v5 = vld [vmem:[#allocation7 + $0x28] sm:$0xff]  ;;  %v515_v6 = vld [vmem:[#allocation7 + $0x30] sm:$0xff] }
  0x81   : > { %986 = vmatprep.subr.mxu0 %v357_v23  ;;  %v516_v7 = vld [vmem:[#allocation7 + $0x38] sm:$0xff]  ;;  %v517_v8 = vld [vmem:[#allocation7 + $0x40] sm:$0xff]  ;;  %v518_v9 = vld [vmem:[#allocation7 + $0x48] sm:$0xff] }
  0x82   : > { %987 = vmatpush3.msra.mxu0 %v357_v23  ;;  %v519_v10 = vld [vmem:[#allocation7 + $0x50] sm:$0xff]  ;;  %v520_v11 = vld [vmem:[#allocation7 + $0x58] sm:$0xff]  ;;  %v521_v12 = vld [vmem:[#allocation7 + $0x60] sm:$0xff] }
  0x83   : > { %988 = vmatprep.subr.mxu0 %v356_v24  ;;  %v522_v13 = vld [vmem:[#allocation7 + $0x68] sm:$0xff]  ;;  %v523_v14 = vld [vmem:[#allocation7 + $0x70] sm:$0xff]  ;;  %v524_v15 = vld [vmem:[#allocation7 + $0x78] sm:$0xff] }
  0x84   : > { %989 = vmatpush3.msra.mxu0 %v356_v24  ;;  %v1579_v16 = vld [vmem:[%s295_s15] ss:$0 sm:$0xff] }
  0x85   : > { %990 = vmatprep.subr.mxu0 %v355_v25 }
  0x86   : > { %991 = vmatpush3.msra.mxu0 %v355_v25 }
  0x87   : > { %992 = vmatprep.subr.mxu0 %v354_v26 }
  0x88   : > { %993 = vmatpush3.msra.mxu0 %v354_v26 }
  0x89   : > { %994 = vmatprep.subr.mxu0 %v353_v27 }
  0x8a   : > { %995 = vmatpush3.msra.mxu0 %v353_v27 }
  0x8b   : > { %996 = vmatprep.subr.mxu0 %v352_v28 }
  0x8c   : > { %997 = vmatpush3.msra.mxu0 %v352_v28 }
  0x8d   : > { %998 = vmatprep.subr.mxu0 %v351_v29 }
  0x8e   : > { %999 = vmatpush3.msra.mxu0 %v351_v29 }
  0x8f   : > { %1000 = vmatprep.subr.mxu0 %v350_v30 }
  0x90   : > { %1001 = vmatpush3.msra.mxu0 %v350_v30 }
  0x91   : > { %1002 = vmatprep.subr.mxu0 %v349_v31 }
  0x92   : > { %1003 = vmatpush3.msra.mxu0 %v349_v31 }
  0x93   : > { %1004 = vmatprep.subr.mxu0 %v348_v32 }
  0x94   : > { %1005 = vmatpush3.msra.mxu0 %v348_v32 }
  0x95   : > { %1007 = vmatmul.mubr.f32.vlgmr.msra.gmra.mxu0 %v333_v33 }
  0x96   : > { %1009 = vmatprep.mubr.f32.mxu0 %v334_v34 }
  0x99   : > { %1010 = vmatmul.mubr.f32.gmra.mxu0 %v335_v35 }
  0x9a   : > { %1012 = vmatprep.mubr.f32.mxu0 %v336_v36 }
  0x9d   : > { %1013 = vmatmul.mubr.f32.gmra.mxu0 %v337_v37 }
  0x9e   : > { %1015 = vmatprep.mubr.f32.mxu0 %v338_v38 }
  0xa1   : > { %1016 = vmatmul.mubr.f32.gmra.mxu0 %v339_v39 }
  0xa2   : > { %1018 = vmatprep.mubr.f32.mxu0 %v340_v40 }
  0xa5   : > { %1019 = vmatmul.mubr.f32.gmra.mxu0 %v341_v41 }
  0xa6   : > { %1021 = vmatprep.mubr.f32.mxu0 %v342_v42 }
  0xa9   : > { %1022 = vmatmul.mubr.f32.gmra.mxu0 %v343_v43 }
  0xaa   : > { %1024 = vmatprep.mubr.f32.mxu0 %v344_v44 }
  0xad   : > { %1025 = vmatmul.mubr.f32.gmra.mxu0 %v345_v45 }
  0xae   : > { %1027 = vmatprep.mubr.f32.mxu0 %v346_v46 }
  0xb1   : > { %1028 = vmatmul.mubr.f32.gmra.mxu0 %v347_v47 }
 0x155   : > { %v1008_v49 = vpop.f32.mrf.mxu0 }
 0x157   : > { %v430_v50 = vpop.f32.mrf.mxu0 }
 0x159   : > { %v1011_v51 = vpop.f32.mrf.mxu0 }
 0x15b   : > { %v440_v52 = vpop.f32.mrf.mxu0 }
 0x15d   : > { %v1014_v53 = vpop.f32.mrf.mxu0 }
 0x15f   : > { %v450_v54 = vpop.f32.mrf.mxu0 }
 0x161   : > { %v1017_v55 = vpop.f32.mrf.mxu0 }
 0x163   : > { %v460_v56 = vpop.f32.mrf.mxu0 }
 0x165   : > { %v1020_v57 = vpop.f32.mrf.mxu0 }
 0x167   : > { %v470_v58 = vpop.f32.mrf.mxu0 }
 0x169   : > { %v1023_v59 = vpop.f32.mrf.mxu0 }
 0x16b   : > { %v480_v60 = vpop.f32.mrf.mxu0 }
 0x16d   : > { %v1026_v61 = vpop.f32.mrf.mxu0 }
 0x16f   : > { %v490_v62 = vpop.f32.mrf.mxu0 }
 0x171   : > { %v1029_v63 = vpop.f32.mrf.mxu0 }
 0x172   : > { %1030 = vmatprep.subr.mxu1 %v1029_v63 }
 0x173   : > { %v500_v0 = vpop.f32.mrf.mxu0  ;;  %1031 = vmatpush3.msra.mxu1 %v1029_v63 }
 0x174   : > { %1032 = vmatprep.subr.mxu1 %v500_v0 }
 0x175   : > { %1033 = vmatpush3.msra.mxu1 %v500_v0 }
 0x176   : > { %1034 = vmatprep.subr.mxu1 %v1026_v61 }
 0x177   : > { %1035 = vmatpush3.msra.mxu1 %v1026_v61 }
 0x178   : > { %1036 = vmatprep.subr.mxu1 %v490_v62 }
 0x179   : > { %1037 = vmatpush3.msra.mxu1 %v490_v62 }
 0x17a   : > { %1038 = vmatprep.subr.mxu1 %v1023_v59 }
 0x17b   : > { %1039 = vmatpush3.msra.mxu1 %v1023_v59 }
 0x17c   : > { %1040 = vmatprep.subr.mxu1 %v480_v60 }
 0x17d   : > { %1041 = vmatpush3.msra.mxu1 %v480_v60 }
 0x17e   : > { %1042 = vmatprep.subr.mxu1 %v1020_v57 }
 0x17f   : > { %1043 = vmatpush3.msra.mxu1 %v1020_v57 }
 0x180   : > { %1044 = vmatprep.subr.mxu1 %v470_v58 }
 0x181   : > { %1045 = vmatpush3.msra.mxu1 %v470_v58 }
 0x182   : > { %1046 = vmatprep.subr.mxu1 %v1017_v55 }
 0x183   : > { %1047 = vmatpush3.msra.mxu1 %v1017_v55 }
 0x184   : > { %1048 = vmatprep.subr.mxu1 %v460_v56 }
 0x185   : > { %1049 = vmatpush3.msra.mxu1 %v460_v56 }
 0x186   : > { %1050 = vmatprep.subr.mxu1 %v1014_v53 }
 0x187   : > { %1051 = vmatpush3.msra.mxu1 %v1014_v53 }
 0x188   : > { %1052 = vmatprep.subr.mxu1 %v450_v54 }
 0x189   : > { %1053 = vmatpush3.msra.mxu1 %v450_v54 }
 0x18a   : > { %1054 = vmatprep.subr.mxu1 %v1011_v51 }
 0x18b   : > { %1055 = vmatpush3.msra.mxu1 %v1011_v51 }
 0x18c   : > { %1056 = vmatprep.subr.mxu1 %v440_v52 }
 0x18d   : > { %1057 = vmatpush3.msra.mxu1 %v440_v52 }
 0x18e   : > { %1058 = vmatprep.subr.mxu1 %v1008_v49 }
 0x18f   : > { %1059 = vmatpush3.msra.mxu1 %v1008_v49 }
 0x190   : > { %1060 = vmatprep.subr.mxu1 %v430_v50 }
 0x191   : > { %1061 = vmatpush3.msra.mxu1 %v430_v50 }
 0x192   : > { %1063 = vmatmul.mubr.f32.vlgmr.msra.gmra.mxu1 %v510_v1 }
 0x193   : > { %1065 = vmatprep.mubr.f32.mxu1 %v511_v2 }
 0x196   : > { %1066 = vmatmul.mubr.f32.gmra.mxu1 %v512_v3 }
 0x197   : > { %1068 = vmatprep.mubr.f32.mxu1 %v513_v4 }
 0x19a   : > { %1069 = vmatmul.mubr.f32.gmra.mxu1 %v514_v5 }
 0x19b   : > { %1071 = vmatprep.mubr.f32.mxu1 %v515_v6 }
 0x19e   : > { %1072 = vmatmul.mubr.f32.gmra.mxu1 %v516_v7 }
 0x19f   : > { %1074 = vmatprep.mubr.f32.mxu1 %v517_v8 }
 0x1a2   : > { %1075 = vmatmul.mubr.f32.gmra.mxu1 %v518_v9 }
 0x1a3   : > { %1077 = vmatprep.mubr.f32.mxu1 %v519_v10 }
 0x1a6   : > { %1078 = vmatmul.mubr.f32.gmra.mxu1 %v520_v11 }
 0x1a7   : > { %1080 = vmatprep.mubr.f32.mxu1 %v521_v12 }
 0x1aa   : > { %1081 = vmatmul.mubr.f32.gmra.mxu1 %v522_v13 }
 0x1ab   : > { %1083 = vmatprep.mubr.f32.mxu1 %v523_v14 }
 0x1ae   : > { %1084 = vmatmul.mubr.f32.gmra.mxu1 %v524_v15 }
 0x252   : > { %v1064_v17 = vpop.f32.mrf.mxu1 }
 0x253   : > { %v604_v19 = vadd.f32 %v1064_v17, %v1579_v16 }
 0x254   : > { %v598_v20 = vpop.f32.mrf.mxu1 }
 0x255   : > { %vm679_vm0 = vcmp.gt.f32.partialorder %v604_v19, 0.0  ;;  %v696_v21 = vmul.f32 %v1581_v18, %v604_v19  ;;  %v599_v22 = vadd.f32 %v1579_v16, %v598_v20 }
 0x256   : > { %v1067_v23 = vpop.f32.mrf.mxu1 }
 0x257   : > { %v712_v24 = vsel %vm679_vm0, %v604_v19, %v696_v21  ;;  %vm678_vm1 = vcmp.gt.f32.partialorder %v599_v22, 0.0  ;;  %v695_v25 = vmul.f32 %v1581_v18, %v599_v22  ;;  %v614_v26 = vadd.f32 %v1067_v23, %v1579_v16 }
 0x258   : > { %728 = vst [vmem:[%s1553_s25 + $0x8] sm:$0xff] %v712_v24  ;;  %744 = vst [vmem:[#allocation2] sm:$0xff] %v712_v24  ;;  %v608_v27 = vpop.f32.mrf.mxu1 }
 0x259   : > { %v711_v28 = vsel %vm678_vm1, %v599_v22, %v695_v25  ;;  %vm681_vm2 = vcmp.gt.f32.partialorder %v614_v26, 0.0  ;;  %v698_v29 = vmul.f32 %v1581_v18, %v614_v26  ;;  %v609_v30 = vadd.f32 %v1579_v16, %v608_v27 }
 0x25a   : > { %727 = vst [vmem:[%s1553_s25] sm:$0xff] %v711_v28  ;;  %743 = vst [vmem:[#allocation2 + $0x30] sm:$0xff] %v711_v28  ;;  %v1070_v31 = vpop.f32.mrf.mxu1 }
 0x25b   : > { %v714_v32 = vsel %vm681_vm2, %v614_v26, %v698_v29  ;;  %vm680_vm3 = vcmp.gt.f32.partialorder %v609_v30, 0.0  ;;  %v697_v33 = vmul.f32 %v1581_v18, %v609_v30  ;;  %v624_v34 = vadd.f32 %v1070_v31, %v1579_v16 }
 0x25c   : > { %730 = vst [vmem:[%s1553_s25 + $0x18] sm:$0xff] %v714_v32  ;;  %746 = vst [vmem:[#allocation2 + $0x18] sm:$0xff] %v714_v32  ;;  %v618_v35 = vpop.f32.mrf.mxu1 }
 0x25d   : > { %v713_v36 = vsel %vm680_vm3, %v609_v30, %v697_v33  ;;  %vm683_vm4 = vcmp.gt.f32.partialorder %v624_v34, 0.0  ;;  %v700_v37 = vmul.f32 %v1581_v18, %v624_v34  ;;  %v619_v38 = vadd.f32 %v1579_v16, %v618_v35 }
 0x25e   : > { %729 = vst [vmem:[%s1553_s25 + $0x10] sm:$0xff] %v713_v36  ;;  %745 = vst [vmem:[#allocation2 + $0x58] sm:$0xff] %v713_v36  ;;  %v1073_v39 = vpop.f32.mrf.mxu1 }
 0x25f   : > { %v716_v40 = vsel %vm683_vm4, %v624_v34, %v700_v37  ;;  %vm682_vm5 = vcmp.gt.f32.partialorder %v619_v38, 0.0  ;;  %v699_v41 = vmul.f32 %v1581_v18, %v619_v38  ;;  %v634_v42 = vadd.f32 %v1073_v39, %v1579_v16 }
 0x260   : > { %732 = vst [vmem:[%s1553_s25 + $0x28] sm:$0xff] %v716_v40  ;;  %748 = vst [vmem:[#allocation2 + $0x68] sm:$0xff] %v716_v40  ;;  %v628_v43 = vpop.f32.mrf.mxu1 }
 0x261   : > { %v715_v44 = vsel %vm682_vm5, %v619_v38, %v699_v41  ;;  %vm685_vm6 = vcmp.gt.f32.partialorder %v634_v42, 0.0  ;;  %v702_v45 = vmul.f32 %v1581_v18, %v634_v42  ;;  %v629_v46 = vadd.f32 %v1579_v16, %v628_v43 }
 0x262   : > { %731 = vst [vmem:[%s1553_s25 + $0x20] sm:$0xff] %v715_v44  ;;  %747 = vst [vmem:[#allocation2 + $0x50] sm:$0xff] %v715_v44  ;;  %v1076_v47 = vpop.f32.mrf.mxu1 }
 0x263   : > { %v718_v48 = vsel %vm685_vm6, %v634_v42, %v702_v45  ;;  %vm684_vm7 = vcmp.gt.f32.partialorder %v629_v46, 0.0  ;;  %v701_v49 = vmul.f32 %v1581_v18, %v629_v46  ;;  %v644_v50 = vadd.f32 %v1076_v47, %v1579_v16 }
 0x264   : > { %734 = vst [vmem:[%s1553_s25 + $0x38] sm:$0xff] %v718_v48  ;;  %750 = vst [vmem:[#allocation2 + $0x48] sm:$0xff] %v718_v48  ;;  %v638_v51 = vpop.f32.mrf.mxu1 }
 0x265   : > { %v717_v52 = vsel %vm684_vm7, %v629_v46, %v701_v49  ;;  %vm687_vm8 = vcmp.gt.f32.partialorder %v644_v50, 0.0  ;;  %v704_v53 = vmul.f32 %v1581_v18, %v644_v50  ;;  %v639_v54 = vadd.f32 %v1579_v16, %v638_v51 }
 0x266   : > { %733 = vst [vmem:[%s1553_s25 + $0x30] sm:$0xff] %v717_v52  ;;  %749 = vst [vmem:[#allocation2 + $0x8] sm:$0xff] %v717_v52  ;;  %v1079_v55 = vpop.f32.mrf.mxu1 }
 0x267   : > { %v720_v56 = vsel %vm687_vm8, %v644_v50, %v704_v53  ;;  %vm686_vm9 = vcmp.gt.f32.partialorder %v639_v54, 0.0  ;;  %v703_v57 = vmul.f32 %v1581_v18, %v639_v54  ;;  %v654_v58 = vadd.f32 %v1079_v55, %v1579_v16 }
 0x268   : > { %736 = vst [vmem:[%s1553_s25 + $0x48] sm:$0xff] %v720_v56  ;;  %752 = vst [vmem:[#allocation2 + $0x20] sm:$0xff] %v720_v56  ;;  %v648_v59 = vpop.f32.mrf.mxu1 }
 0x269   : > { %v719_v60 = vsel %vm686_vm9, %v639_v54, %v703_v57  ;;  %vm689_vm10 = vcmp.gt.f32.partialorder %v654_v58, 0.0  ;;  %v706_v61 = vmul.f32 %v1581_v18, %v654_v58  ;;  %v649_v62 = vadd.f32 %v1579_v16, %v648_v59 }
 0x26a   : > { %735 = vst [vmem:[%s1553_s25 + $0x40] sm:$0xff] %v719_v60  ;;  %751 = vst [vmem:[#allocation2 + $0x40] sm:$0xff] %v719_v60  ;;  %v1082_v63 = vpop.f32.mrf.mxu1 }
 0x26b   : > { %v722_v0 = vsel %vm689_vm10, %v654_v58, %v706_v61  ;;  %vm688_vm11 = vcmp.gt.f32.partialorder %v649_v62, 0.0  ;;  %v705_v1 = vmul.f32 %v1581_v18, %v649_v62  ;;  %v664_v2 = vadd.f32 %v1082_v63, %v1579_v16 }
 0x26c   : > { %738 = vst [vmem:[%s1553_s25 + $0x58] sm:$0xff] %v722_v0  ;;  %754 = vst [vmem:[#allocation2 + $0x38] sm:$0xff] %v722_v0  ;;  %v658_v3 = vpop.f32.mrf.mxu1 }
 0x26d   : > { %v721_v4 = vsel %vm688_vm11, %v649_v62, %v705_v1  ;;  %vm691_vm12 = vcmp.gt.f32.partialorder %v664_v2, 0.0  ;;  %v708_v5 = vmul.f32 %v1581_v18, %v664_v2  ;;  %v659_v6 = vadd.f32 %v1579_v16, %v658_v3 }
 0x26e   : > { %737 = vst [vmem:[%s1553_s25 + $0x50] sm:$0xff] %v721_v4  ;;  %753 = vst [vmem:[#allocation2 + $0x10] sm:$0xff] %v721_v4  ;;  %v1085_v7 = vpop.f32.mrf.mxu1 }
 0x26f   : > { %v724_v8 = vsel %vm691_vm12, %v664_v2, %v708_v5  ;;  %vm690_vm13 = vcmp.gt.f32.partialorder %v659_v6, 0.0  ;;  %v707_v9 = vmul.f32 %v1581_v18, %v659_v6  ;;  %v674_v10 = vadd.f32 %v1085_v7, %v1579_v16 }
 0x270   : > { %740 = vst [vmem:[%s1553_s25 + $0x68] sm:$0xff] %v724_v8  ;;  %756 = vst [vmem:[#allocation2 + $0x70] sm:$0xff] %v724_v8  ;;  %v668_v11 = vpop.f32.mrf.mxu1 }
 0x271   : > { %v723_v12 = vsel %vm690_vm13, %v659_v6, %v707_v9  ;;  %vm693_vm14 = vcmp.gt.f32.partialorder %v674_v10, 0.0  ;;  %v710_v13 = vmul.f32 %v1581_v18, %v674_v10  ;;  %v669_v14 = vadd.f32 %v1579_v16, %v668_v11 }
 0x272   : > { %739 = vst [vmem:[%s1553_s25 + $0x60] sm:$0xff] %v723_v12  ;;  %755 = vst [vmem:[#allocation2 + $0x60] sm:$0xff] %v723_v12 }
 0x273   : > { %v726_v15 = vsel %vm693_vm14, %v674_v10, %v710_v13  ;;  %vm692_vm15 = vcmp.gt.f32.partialorder %v669_v14, 0.0  ;;  %v709_v17 = vmul.f32 %v1581_v18, %v669_v14 }
 0x274   : > { %742 = vst [vmem:[%s1553_s25 + $0x78] sm:$0xff] %v726_v15  ;;  %758 = vst [vmem:[#allocation2 + $0x28] sm:$0xff] %v726_v15 }
 0x275   : > { %v725_v16 = vsel %vm692_vm15, %v669_v14, %v709_v17 }
 0x276   : > { %741 = vst [vmem:[%s1553_s25 + $0x70] sm:$0xff] %v725_v16  ;;  %757 = vst [vmem:[#allocation2 + $0x78] sm:$0xff] %v725_v16 }
 0x277   : > { %1271 = shalt.err (!%p1268_p4)
}
 0x278   : > { %s1272_s7 = scalar_lea.hbm %s1634_s22, 2048  ;;  %s1276_s15 = scalar_lea.hbm %s1688_s5, 4096 }
 0x279   : > { %p1273_p3 = scmp.ne.s32.totalorder %s1634_s22, %s1272_s7  ;;  %p1277_p13 = scmp.lt.s32.totalorder %s1634_s22, %s1688_s5 }
 0x27a   : > { %p1278_p1 = scmp.lt.s32.totalorder %s1276_s15, %s1272_s7 }
 0x27b   : > { %p1274_p12 = pnand %p1273_p3, %p1711_p7 }
 0x27c   : > { %p1279_p5 = por %p1278_p1, %p1277_p13 }
 0x27d   : > { %p1275_p11 = pneg %p1274_p12 }
 0x27f   : > { %p1280_p2 = pnand %p1279_p5, %p1275_p11 }
 0x281   : > { %1283 = shalt.err (!%p1280_p2)
}
 0x282   : > { %s1343_s26 = smov 128   ;;  %s1344_s8 = smov 8  }
 0x283   : > { %1100 = dma.vmem_to_hbm [thread:$0]  (%p1711_p7), %s1636_s17, 2048, %s1634_s22, %s1642_s0, %s1343_s26, %s1343_s26, %s1344_s8  }
 0x284 PF: > { %s788_s14 = sand.u32 1, %s1322_s18   ;;  %p1712_p0 = scmp.ne.s32.totalorder %s1697_s6, 0 }
 0x285   : > { %p1713_p9 = scmp.ge.s32.totalorder %s1334_s21, 2  ;;  %s789_s10 = scalar_lea.sflag [#allocation5], %s788_s14 }
 0x287   : > { %p1117_p8 = pnand %p1713_p9, %p1712_p0 }
 0x289   : > { %p1118_p10 = pneg %p1117_p8 }
 0x28b   : > { %1317 = dma.done.wait (%p1118_p10), %s789_s10, 2048  }
 0x28c   : > { %1319 = vsyncadd (%p1118_p10), %s789_s10, 4294965248  ;;  %p18_p6 = scmp.ge.s32.totalorder %s1400_s24, 4   ;;  %s1714_s18 = smov %s1326_s19 }
 0x28d   : > { %s1715_s19 = smov %s1330_s20  ;;  %s1716_s20 = smov %s1412_s27 }
 0x28e   : > { %s1717_s21 = smov %s1400_s24  ;;  %20 = sbr.rel (!%p18_p6) target bundleno = 8 (0x8), region = 104 }
 0x293   :  { %794 = vsyncpa [#allocation4], 1 }
 0x294   :  { %796 = vsyncpa [#allocation4 + $0x1], 1 }
 0x295   :  { %797 = vsyncpa [#allocation9], 1 }
 0x296   :  { %798 = vsyncpa [#allocation5], 1 }
 0x297   :  { %800 = vsyncpa [#allocation5 + $0x1], 1 }
 0x298   :  { %801 = vsyncpa [#allocation6], 1 }
 0x299   :  { %803 = vsyncpa [#allocation6 + $0x1], 1 }

</bundles_post_ra>
